<compile_context>
chip_gen: v6e
topology: v6e:2x2x1
jax: 0.10.0
libtpu: 0.0.40
codegen_flags: <defaults>
</compile_context>

<pallas_src>
import functools

import jax
import jax.numpy as jnp
from jax.experimental import pallas as pl
from jax.experimental.pallas import tpu as pltpu


_TB = 256                      # row-tile cap (multiple of 32 -> dense int8 stores)
_TN = 1024                     # column-tile cap (multiple of 128 -> lane-dense)
_SPLIT_MIN_ELEMS = 128 * 1024  # only split a (1,1) grid above this size


def _div10(x):
    """Exact x // 10 for int32 x with 0 <= x <= 16383 (unsigned magic multiply)."""
    return (x * 6554) >> 16


def _digit_match_4digit(a, c):
    """Matching-digit count for 0 <= a, c < 10000 (int32); 6 cheap divides."""
    aq1, cq1 = _div10(a), _div10(c)
    aq2, cq2 = _div10(aq1), _div10(cq1)
    aq3, cq3 = _div10(aq2), _div10(cq2)     # == thousands digit (< 10)
    e0 = a - c
    e1 = aq1 - cq1
    e2 = aq2 - cq2
    e3 = aq3 - cq3
    return (
        (e0 == 10 * e1).astype(jnp.int32)    # units
        + (e1 == 10 * e2).astype(jnp.int32)  # tens
        + (e2 == 10 * e3).astype(jnp.int32)  # hundreds
        + (e3 == 0).astype(jnp.int32)        # thousands
    )


def _digit_match_generic(a, c):
    """Exact matching-digit count for any int32 a, c (floor division)."""
    aq1, cq1 = a // 10, c // 10
    aq2, cq2 = aq1 // 10, cq1 // 10
    aq3, cq3 = aq2 // 10, cq2 // 10
    aq4, cq4 = aq3 // 10, cq3 // 10
    e0 = a - c
    e1 = aq1 - cq1
    e2 = aq2 - cq2
    e3 = aq3 - cq3
    e4 = aq4 - cq4
    return (
        (e0 == 10 * e1).astype(jnp.int32)
        + (e1 == 10 * e2).astype(jnp.int32)
        + (e2 == 10 * e3).astype(jnp.int32)
        + (e3 == 10 * e4).astype(jnp.int32)
    )


def _match_kernel(actor_ref, critic_ref, match_ref, *, four_digit):
    a = actor_ref[...].astype(jnp.int32)   # widen (int16/int32 inputs) in-kernel
    c = critic_ref[...].astype(jnp.int32)
    m = _digit_match_4digit(a, c) if four_digit else _digit_match_generic(a, c)
    match_ref[...] = m.astype(match_ref.dtype)


def _pick_tiles(B, N):
    tb = B if B <= _TB else _TB
    tn = N if N <= _TN else _TN
    # For big problems that would compile to a (1,1) grid, split one
    # "parallel" axis so v7x's two TensorCores both get work and the
    # double-buffered pipeline actually engages.
    if pl.cdiv(B, tb) * pl.cdiv(N, tn) < 2 and B * N >= _SPLIT_MIN_ELEMS:
        if N >= 256:
            tn_half = 128 * pl.cdiv(pl.cdiv(N, 2), 128)
            if 128 <= tn_half < N:
                tn = tn_half
        if pl.cdiv(B, tb) * pl.cdiv(N, tn) < 2 and B >= 64:
            tb_half = 32 * pl.cdiv(pl.cdiv(B, 2), 32)
            if 32 <= tb_half < B:
                tb = tb_half
    return tb, tn


def environment_forward(actor_actions, critic_actions, device=None, *,
                        tile=None, match_dtype=jnp.int8, four_digit=True):
    """Pallas implementation of Environment.forward (`device` is unused).

    four_digit=True assumes 0 <= actions < 10000 (module's documented
    precondition) and uses the magic-multiply fast path; pass
    four_digit=False for arbitrary int32 inputs.  match_dtype defaults to
    int8 (values are 0..4); pass jnp.int32 if the caller needs the old dtype.
    """
    assert actor_actions.shape == critic_actions.shape
    assert actor_actions.ndim == 2
    B, N = actor_actions.shape

    if tile is None:
        tb, tn = _pick_tiles(B, N)
    else:
        tb, tn = tile
        tb, tn = min(tb, B), min(tn, N)

    grid = (pl.cdiv(B, tb), pl.cdiv(N, tn))

    match = pl.pallas_call(
        functools.partial(_match_kernel, four_digit=four_digit),
        out_shape=jax.ShapeDtypeStruct((B, N), match_dtype),
        grid=grid,
        in_specs=[
            pl.BlockSpec((tb, tn), lambda i, j: (i, j)),
            pl.BlockSpec((tb, tn), lambda i, j: (i, j)),
        ],
        out_specs=pl.BlockSpec((tb, tn), lambda i, j: (i, j)),
        compiler_params=pltpu.CompilerParams(
            dimension_semantics=("parallel", "parallel"),
        ),
    )(actor_actions, critic_actions)

    # simToReward + mean: depends only on row 0 of `match` (O(N) work), so it
    # is a tiny plain-XLA epilogue (no HBM row slices, no second launch, no
    # duplicated digit math), per perf review.
    row0 = match[0].astype(jnp.int32)
    mapped = jnp.where(
        (row0 == 1) | (row0 == 2),
        row0 * 10,
        jnp.where(row0 == 3, jnp.int32(100), jnp.int32(0)),
    )
    # Faithful to the reference quirk: only columns i < B are remapped.
    rewards = jnp.where(jnp.arange(N) < B, mapped, row0).astype(jnp.float32)
    return rewards.mean(), match


def _reference(actor, critic):
    """Pure-JAX reference mirroring the PyTorch code, for a sanity check."""
    a = actor.astype(jnp.int32)
    c = critic.astype(jnp.int32)
    same = (
        (a // 1000 % 10 == c // 1000 % 10).astype(jnp.int32)
        + (a // 100 % 10 == c // 100 % 10).astype(jnp.int32)
        + (a // 10 % 10 == c // 10 % 10).astype(jnp.int32)
        + (a % 10 == c % 10).astype(jnp.int32)
    )
    B, N = a.shape
    row0 = same[0]
    mapped = jnp.where(
        (row0 == 1) | (row0 == 2),
        row0 * 10,
        jnp.where(row0 == 3, jnp.int32(100), jnp.int32(0)),
    )
    rewards = jnp.where(jnp.arange(N) < B, mapped, row0)
    return rewards.astype(jnp.float32).mean(), same


if __name__ == "__main__":
    key = jax.random.PRNGKey(0)
    k1, k2, k3 = jax.random.split(key, 3)
    B, N = 16, 384
    actor_actions = jax.random.randint(k1, (B, N), 1000, 10000, dtype=jnp.int32)
    # make critic partially agree with actor so several digit counts show up
    critic_actions = jnp.where(
        jax.random.bernoulli(k2, 0.5, (B, N)),
        actor_actions,
        jax.random.randint(k3, (B, N), 1000, 10000, dtype=jnp.int32),
    )

    ref_mean, ref_match = _reference(actor_actions, critic_actions)

    runs = (
        dict(),                                          # default: 4-digit fast path, int8 match
        dict(tile=(32, 128)),                            # multi-tile grid path
        dict(four_digit=False, match_dtype=jnp.int32),   # exact path, wide output
    )
    for kwargs in runs:
        mean_reward, match = environment_forward(
            actor_actions, critic_actions, **kwargs
        )
        jax.block_until_ready((mean_reward, match))
        assert jnp.allclose(mean_reward, ref_mean), (kwargs, mean_reward, ref_mean)
        assert jnp.array_equal(match, ref_match), kwargs

    # int16 actions (4-digit values fit): halves input HBM bytes on v5e/v6e.
    mean16, match16 = environment_forward(
        actor_actions.astype(jnp.int16), critic_actions.astype(jnp.int16)
    )
    jax.block_until_ready((mean16, match16))
    assert jnp.allclose(mean16, ref_mean)
    assert jnp.array_equal(match16, ref_match)

    print("KERNEL_OK")
</pallas_src>

<mosaic_0001>
module attributes {stable_mosaic.version = 11 : i64} {
  func.func @_match_kernel(%arg0: i32, %arg1: i32, %arg2: memref<16x384xi32, #tpu.memory_space<vmem>>, %arg3: memref<16x384xi32, #tpu.memory_space<vmem>>, %arg4: memref<16x384xi8, #tpu.memory_space<vmem>>) attributes {dimension_semantics = [#tpu.dimension_semantics<parallel>, #tpu.dimension_semantics<parallel>], iteration_bounds = array<i64: 1, 1>, scalar_prefetch = 0 : i64, scratch_operands = 0 : i64, tpu.core_type = #tpu.core_type<tc>, window_params = [{transform_indices = @transform_0, window_bounds = array<i64: 16, 384>}, {transform_indices = @transform_1, window_bounds = array<i64: 16, 384>}, {transform_indices = @transform_2, window_bounds = array<i64: 16, 384>}]} {
    %c0 = arith.constant 0 : index
    %c0_0 = arith.constant 0 : index
    %0 = vector.load %arg2[%c0, %c0_0] : memref<16x384xi32, #tpu.memory_space<vmem>>, vector<16x384xi32>
    %c0_1 = arith.constant 0 : index
    %c0_2 = arith.constant 0 : index
    %1 = vector.load %arg3[%c0_1, %c0_2] : memref<16x384xi32, #tpu.memory_space<vmem>>, vector<16x384xi32>
    %c6554_i32 = arith.constant 6554 : i32
    %2 = vector.broadcast %c6554_i32 : i32 to vector<16x384xi32>
    %3 = arith.muli %0, %2 : vector<16x384xi32>
    %c16_i32 = arith.constant 16 : i32
    %4 = vector.broadcast %c16_i32 : i32 to vector<16x384xi32>
    %5 = arith.shrsi %3, %4 : vector<16x384xi32>
    %c6554_i32_3 = arith.constant 6554 : i32
    %6 = vector.broadcast %c6554_i32_3 : i32 to vector<16x384xi32>
    %7 = arith.muli %1, %6 : vector<16x384xi32>
    %c16_i32_4 = arith.constant 16 : i32
    %8 = vector.broadcast %c16_i32_4 : i32 to vector<16x384xi32>
    %9 = arith.shrsi %7, %8 : vector<16x384xi32>
    %c6554_i32_5 = arith.constant 6554 : i32
    %10 = vector.broadcast %c6554_i32_5 : i32 to vector<16x384xi32>
    %11 = arith.muli %5, %10 : vector<16x384xi32>
    %c16_i32_6 = arith.constant 16 : i32
    %12 = vector.broadcast %c16_i32_6 : i32 to vector<16x384xi32>
    %13 = arith.shrsi %11, %12 : vector<16x384xi32>
    %c6554_i32_7 = arith.constant 6554 : i32
    %14 = vector.broadcast %c6554_i32_7 : i32 to vector<16x384xi32>
    %15 = arith.muli %9, %14 : vector<16x384xi32>
    %c16_i32_8 = arith.constant 16 : i32
    %16 = vector.broadcast %c16_i32_8 : i32 to vector<16x384xi32>
    %17 = arith.shrsi %15, %16 : vector<16x384xi32>
    %c6554_i32_9 = arith.constant 6554 : i32
    %18 = vector.broadcast %c6554_i32_9 : i32 to vector<16x384xi32>
    %19 = arith.muli %13, %18 : vector<16x384xi32>
    %c16_i32_10 = arith.constant 16 : i32
    %20 = vector.broadcast %c16_i32_10 : i32 to vector<16x384xi32>
    %21 = arith.shrsi %19, %20 : vector<16x384xi32>
    %c6554_i32_11 = arith.constant 6554 : i32
    %22 = vector.broadcast %c6554_i32_11 : i32 to vector<16x384xi32>
    %23 = arith.muli %17, %22 : vector<16x384xi32>
    %c16_i32_12 = arith.constant 16 : i32
    %24 = vector.broadcast %c16_i32_12 : i32 to vector<16x384xi32>
    %25 = arith.shrsi %23, %24 : vector<16x384xi32>
    %26 = arith.subi %0, %1 : vector<16x384xi32>
    %27 = arith.subi %5, %9 : vector<16x384xi32>
    %28 = arith.subi %13, %17 : vector<16x384xi32>
    %29 = arith.subi %21, %25 : vector<16x384xi32>
    %c10_i32 = arith.constant 10 : i32
    %30 = vector.broadcast %c10_i32 : i32 to vector<16x384xi32>
    %31 = arith.muli %30, %27 : vector<16x384xi32>
    %32 = arith.cmpi eq, %26, %31 : vector<16x384xi32>
    %33 = arith.extui %32 : vector<16x384xi1> to vector<16x384xi32>
    %c10_i32_13 = arith.constant 10 : i32
    %34 = vector.broadcast %c10_i32_13 : i32 to vector<16x384xi32>
    %35 = arith.muli %34, %28 : vector<16x384xi32>
    %36 = arith.cmpi eq, %27, %35 : vector<16x384xi32>
    %37 = arith.extui %36 : vector<16x384xi1> to vector<16x384xi32>
    %38 = arith.addi %33, %37 : vector<16x384xi32>
    %c10_i32_14 = arith.constant 10 : i32
    %39 = vector.broadcast %c10_i32_14 : i32 to vector<16x384xi32>
    %40 = arith.muli %39, %29 : vector<16x384xi32>
    %41 = arith.cmpi eq, %28, %40 : vector<16x384xi32>
    %42 = arith.extui %41 : vector<16x384xi1> to vector<16x384xi32>
    %43 = arith.addi %38, %42 : vector<16x384xi32>
    %c0_i32 = arith.constant 0 : i32
    %44 = vector.broadcast %c0_i32 : i32 to vector<16x384xi32>
    %45 = arith.cmpi eq, %29, %44 : vector<16x384xi32>
    %46 = arith.extui %45 : vector<16x384xi1> to vector<16x384xi32>
    %47 = arith.addi %43, %46 : vector<16x384xi32>
    %48 = arith.trunci %47 : vector<16x384xi32> to vector<16x384xi8>
    %c0_15 = arith.constant 0 : index
    %c0_16 = arith.constant 0 : index
    %49 = vector.load %arg4[%c0_15, %c0_16] : memref<16x384xi8, #tpu.memory_space<vmem>>, vector<16x384xi8>
    tpu.vector_store %arg4[%c0_15, %c0_16], %48 {strides = array<i32>} : memref<16x384xi8, #tpu.memory_space<vmem>>, vector<16x384xi8>,
    return
  }
  func.func @transform_0(%arg0: i32, %arg1: i32) -> (i32, i32) {
    %c0_i32 = arith.constant 0 : i32
    return %arg0, %arg1 : i32, i32
  }
  func.func @transform_1(%arg0: i32, %arg1: i32) -> (i32, i32) {
    %c0_i32 = arith.constant 0 : i32
    return %arg0, %arg1 : i32, i32
  }
  func.func @transform_2(%arg0: i32, %arg1: i32) -> (i32, i32) {
    %c0_i32 = arith.constant 0 : i32
    return %arg0, %arg1 : i32, i32
  }
}

</mosaic_0001>

<bundles_post_ra>
// kernel: tpu_custom_call.1
= control target key start
LH: loop header
LB: loop body
LE: loop exit
PB: predicated region body
PF: predicated region fallthrough
CT: control target
= control target key end

     0   :  { %7 = vsyncpa [#allocation3], 0  ;;  %s423_s0 = inlined_call_operand.hbm [shape: s32[16,384], index: 0, kind: input, shape index: {}]   ;;  %s424_s1 = inlined_call_operand.hbm [shape: s32[16,384], index: 1, kind: input, shape index: {}]   ;;  %s425_s2 = inlined_call_operand.hbm [shape: s8[16,384], index: 2, kind: output, shape index: {}]  }
   0x1   :  { %8 = vsyncpa [#allocation6], 0 }
   0x2   :  { %9 = vsyncpa [#allocation4], 0  ;;  %s332_s9 = smov [#allocation2]  }
   0x3   :  { %s15_s10 = sshll.u32 %s332_s9, 4  ;;  %s16_s10 = int_to_ptr.vmem [resolvable:$true] %s15_s10 }
   0x4   :  { %s274_s11 = scalar_lea.vmem %s16_s10, 768  ;;  %p279_p1 = scmp.lt.s32.totalorder %s16_s10, %s16_s10 }
   0x5   :  { %p275_p0 = scmp.ne.s32.totalorder %s16_s10, %s274_s11  ;;  %p280_p2 = scmp.lt.s32.totalorder %s274_s11, %s274_s11 }
   0x7   :  { %p281_p3 = por %p280_p2, %p279_p1 }
   0x9   :  { %p282_p4 = pnand %p281_p3, %p275_p0 }
   0xb   :  { %285 = shalt.err (!%p282_p4)
}
   0xc   :  { %s333_s12 = smov 384   ;;  %s334_s13 = smov 24  }
   0xd   :  { %21 = dma.hbm_to_vmem [thread:$0]  %s423_s0, 768, %s16_s10, [#allocation3], %s333_s12, %s333_s12, %s334_s13  }
   0xe   :  { %s335_s16 = smov [#allocation5]  }
   0xf   :  { %s27_s17 = sshll.u32 %s335_s16, 4  ;;  %s28_s17 = int_to_ptr.vmem [resolvable:$true] %s27_s17 }
  0x10   :  { %s294_s18 = scalar_lea.vmem %s28_s17, 768  ;;  %p299_p6 = scmp.lt.s32.totalorder %s28_s17, %s28_s17 }
  0x11   :  { %p295_p5 = scmp.ne.s32.totalorder %s28_s17, %s294_s18  ;;  %p300_p7 = scmp.lt.s32.totalorder %s294_s18, %s294_s18 }
  0x13   :  { %p301_p8 = por %p300_p7, %p299_p6 }
  0x15   :  { %p302_p9 = pnand %p301_p8, %p295_p5 }
  0x17   :  { %305 = shalt.err (!%p302_p9)
}
  0x18   :  { %33 = dma.hbm_to_vmem [thread:$0]  %s424_s1, 768, %s28_s17, [#allocation6], %s333_s12, %s333_s12, %s334_s13  }
  0x19   :  { %326 = dma.done.wait [#allocation3], 768  }
  0x1a   :  { %327 = vsyncadd [#allocation3], 4294966528 }
  0x1b   :  { %328 = dma.done.wait [#allocation6], 768  }
  0x1c   :  { %329 = vsyncadd [#allocation6], 4294966528  ;;  %v361_v0 = vld [vmem:[#allocation2] sm:$0xff]  ;;  %v363_v1 = vld [vmem:[#allocation2 + $0x8] sm:$0xff]  ;;  %v336_v63 = vmov 0   ;;  %s337_s0 = smov [#allocation7]  }
  0x1d   :  { %v365_v2 = vld [vmem:[#allocation2 + $0x10] sm:$0xff]  ;;  %v47_v4 = vld [vmem:[#allocation5 + $0x8] sm:$0xff]  ;;  %v48_v5 = vld [vmem:[#allocation5 + $0x10] sm:$0xff]  ;;  %v52_v6 = vmul.u32 6554, %v361_v0  ;;  %v53_v7 = vmul.u32 6554, %v363_v1  ;;  %s245_s1 = sshll.u32 %s337_s0, 4  ;;  %s246_s1 = int_to_ptr.vmem [resolvable:$true] %s245_s1 }
  0x1e   :  { %v46_v3 = vld [vmem:[#allocation5] sm:$0xff]  ;;  %v54_v8 = vmul.u32 6554, %v365_v2  ;;  %v371_v11 = vld [vmem:[#allocation2 + $0x18] sm:$0xff]  ;;  %v65_v14 = vmul.u32 6554, %v47_v4  ;;  %v125_v18 = vsub.s32 %v363_v1, %v47_v4  ;;  %v126_v26 = vsub.s32 %v365_v2, %v48_v5  ;;  %v378_v56 = vld [vmem:[#allocation5 + $0x18] sm:$0xff]  ;;  %s306_s21 = scalar_lea.vmem %s246_s1, 192  ;;  %p311_p11 = scmp.lt.s32.totalorder %s246_s1, %s246_s1 }
  0x1f   :  { %v64_v9 = vmul.u32 6554, %v46_v3  ;;  %v124_v10 = vsub.s32 %v361_v0, %v46_v3  ;;  %v58_v12 = vshra.s32 %v52_v6, 16  ;;  %v59_v13 = vshra.s32 %v53_v7, 16  ;;  %p307_p10 = scmp.ne.s32.totalorder %s246_s1, %s306_s21  ;;  %p312_p12 = scmp.lt.s32.totalorder %s306_s21, %s306_s21 }
  0x20   :  { %v66_v15 = vmul.u32 6554, %v48_v5  ;;  %v60_v16 = vshra.s32 %v54_v8, 16  ;;  %v55_v19 = vmul.u32 6554, %v371_v11  ;;  %v71_v20 = vshra.s32 %v65_v14, 16 }
  0x21   :  { %v70_v17 = vshra.s32 %v64_v9, 16  ;;  %v76_v22 = vmul.u32 6554, %v58_v12  ;;  %v77_v23 = vmul.u32 6554, %v59_v13  ;;  %v127_v60 = vsub.s32 %v371_v11, %v378_v56  ;;  %p313_p13 = por %p312_p12, %p311_p11 }
  0x22   :  { %v72_v21 = vshra.s32 %v66_v15, 16  ;;  %v78_v24 = vmul.u32 6554, %v60_v16  ;;  %v89_v30 = vmul.u32 6554, %v71_v20  ;;  %v131_v34 = vsub.s32 %v59_v13, %v71_v20 }
  0x23   :  { %v88_v25 = vmul.u32 6554, %v70_v17  ;;  %v130_v27 = vsub.s32 %v58_v12, %v70_v17  ;;  %v82_v28 = vshra.s32 %v76_v22, 16  ;;  %v83_v29 = vshra.s32 %v77_v23, 16  ;;  %p314_p0 = pnand %p313_p13, %p307_p10 }
  0x24   :  { %v90_v31 = vmul.u32 6554, %v72_v21  ;;  %v84_v32 = vshra.s32 %v78_v24, 16  ;;  %v376_v35 = vshra.s32 %v55_v19, 16  ;;  %v95_v36 = vshra.s32 %v89_v30, 16 }
  0x25   :  { %v94_v33 = vshra.s32 %v88_v25, 16  ;;  %v100_v38 = vmul.u32 6554, %v82_v28  ;;  %v101_v39 = vmul.u32 6554, %v83_v29  ;;  %v132_v42 = vsub.s32 %v60_v16, %v72_v21  ;;  %v393_v21 = vld [vmem:[#allocation2 + $0x28] sm:$0xff]  ;;  %v50_v25 = vld [vmem:[#allocation5 + $0x20] sm:$0xff] }
  0x26   :  { %v96_v37 = vshra.s32 %v90_v31, 16  ;;  %v102_v40 = vmul.u32 6554, %v84_v32  ;;  %v113_v46 = vmul.u32 6554, %v95_v36  ;;  %v137_v50 = vsub.s32 %v83_v29, %v95_v36 }
  0x27   :  { %v112_v41 = vmul.u32 6554, %v94_v33  ;;  %v136_v43 = vsub.s32 %v82_v28, %v94_v33  ;;  %v106_v44 = vshra.s32 %v100_v38, 16  ;;  %v107_v45 = vshra.s32 %v101_v39, 16 }
  0x28   :  { %v114_v47 = vmul.u32 6554, %v96_v37  ;;  %v108_v48 = vshra.s32 %v102_v40, 16  ;;  %v138_v51 = vsub.s32 %v84_v32, %v96_v37  ;;  %v119_v52 = vshra.s32 %v113_v46, 16 }
  0x29   :  { %v118_v49 = vshra.s32 %v112_v41, 16  ;;  %v148_v54 = vmul.u32 10, %v130_v27  ;;  %v149_v55 = vmul.u32 10, %v131_v34 }
  0x2a   :  { %v120_v53 = vshra.s32 %v114_v47, 16  ;;  %v150_v58 = vmul.u32 10, %v132_v42  ;;  %v166_v59 = vmul.u32 10, %v136_v43  ;;  %v143_v61 = vsub.s32 %v107_v45, %v119_v52 }
  0x2b   :  { %v142_v57 = vsub.s32 %v106_v44, %v118_v49  ;;  %vm154_vm0 = vcmp.eq.s32.totalorder %v124_v10, %v148_v54  ;;  %vm155_vm1 = vcmp.eq.s32.totalorder %v125_v18, %v149_v55  ;;  %v167_v2 = vmul.u32 10, %v137_v50  ;;  %v391_v18 = vld [vmem:[#allocation2 + $0x20] sm:$0xff] }
  0x2c   :  { %v144_v62 = vsub.s32 %v108_v48, %v120_v53  ;;  %vm156_vm2 = vcmp.eq.s32.totalorder %v126_v26, %v150_v58  ;;  %v160_v0 = vsel %vm154_vm0, 1, %v336_v63  ;;  %v161_v1 = vsel %vm155_vm1, 1, %v336_v63  ;;  %v51_v26 = vld [vmem:[#allocation5 + $0x28] sm:$0xff] }
  0x2d   :  { %v162_v3 = vsel %vm156_vm2, 1, %v336_v63  ;;  %v168_v4 = vmul.u32 10, %v138_v51  ;;  %vm172_vm3 = vcmp.eq.s32.totalorder %v130_v27, %v166_v59  ;;  %v190_v5 = vmul.u32 10, %v142_v57 }
  0x2e   :  { %vm173_vm4 = vcmp.eq.s32.totalorder %v131_v34, %v167_v2  ;;  %v178_v6 = vsel %vm172_vm3, 1, %v336_v63  ;;  %v191_v7 = vmul.u32 10, %v143_v61  ;;  %v192_v8 = vmul.u32 10, %v144_v62 }
  0x2f   :  { %vm174_vm5 = vcmp.eq.s32.totalorder %v132_v42, %v168_v4  ;;  %v179_v9 = vsel %vm173_vm4, 1, %v336_v63  ;;  %v184_v10 = vadd.s32 %v178_v6, %v160_v0  ;;  %vm196_vm6 = vcmp.eq.s32.totalorder %v136_v43, %v190_v5 }
  0x30   :  { %v180_v12 = vsel %vm174_vm5, 1, %v336_v63  ;;  %v185_v13 = vadd.s32 %v179_v9, %v161_v1  ;;  %vm197_vm7 = vcmp.eq.s32.totalorder %v137_v50, %v191_v7  ;;  %vm198_vm8 = vcmp.eq.s32.totalorder %v138_v51, %v192_v8 }
  0x31   :  { %v186_v14 = vadd.s32 %v180_v12, %v162_v3  ;;  %v202_v15 = vsel %vm196_vm6, 1, %v336_v63  ;;  %v203_v16 = vsel %vm197_vm7, 1, %v336_v63  ;;  %v204_v17 = vsel %vm198_vm8, 1, %v336_v63 }
  0x32   :  { %v208_v19 = vadd.s32 %v202_v15, %v184_v10  ;;  %v209_v20 = vadd.s32 %v203_v16, %v185_v13  ;;  %vm214_vm9 = vcmp.eq.s32.totalorder %v142_v57, 0  ;;  %vm215_vm10 = vcmp.eq.s32.totalorder %v143_v61, 0 }
  0x33   :  { %v210_v22 = vadd.s32 %v204_v17, %v186_v14  ;;  %vm216_vm11 = vcmp.eq.s32.totalorder %v144_v62, 0  ;;  %v220_v23 = vsel %vm214_vm9, 1, %v336_v63  ;;  %v221_v24 = vsel %vm215_vm10, 1, %v336_v63 }
  0x34   :  { %v222_v27 = vsel %vm216_vm11, 1, %v336_v63  ;;  %v226_v28 = vadd.s32 %v220_v23, %v208_v19  ;;  %v227_v29 = vadd.s32 %v221_v24, %v209_v20  ;;  %v56_v30 = vmul.u32 6554, %v391_v18 }
  0x35   :  { %v228_v31 = vadd.s32 %v222_v27, %v210_v22  ;;  %v57_v32 = vmul.u32 6554, %v393_v21  ;;  %v67_v33 = vmul.u32 6554, %v378_v56  ;;  %v128_v34 = vsub.s32 %v391_v18, %v50_v25 }
  0x36   :  { %v232_v36 = vpack.c.b16 %v227_v29, %v226_v28  ;;  %v62_v37 = vshra.s32 %v56_v30, 16  ;;  %v68_v38 = vmul.u32 6554, %v50_v25  ;;  %v69_v39 = vmul.u32 6554, %v51_v26 }
  0x37   :  { %v233_v40 = vpack.c.b16 %v228_v31, %v228_v31  ;;  %v63_v41 = vshra.s32 %v57_v32, 16  ;;  %v73_v42 = vshra.s32 %v67_v33, 16  ;;  %v79_v43 = vmul.u32 6554, %v376_v35 }
  0x38   :  { %v74_v44 = vshra.s32 %v68_v38, 16  ;;  %v75_v45 = vshra.s32 %v69_v39, 16  ;;  %v80_v46 = vmul.u32 6554, %v62_v37  ;;  %v129_v47 = vsub.s32 %v393_v21, %v51_v26 }
  0x39   :  { %v234_v48 = vpack.c.b8 %v233_v40, %v232_v36  ;;  %v81_v49 = vmul.u32 6554, %v63_v41  ;;  %v85_v50 = vshra.s32 %v79_v43, 16  ;;  %v91_v51 = vmul.u32 6554, %v73_v42 }
  0x3a   :  { %v86_v52 = vshra.s32 %v80_v46, 16  ;;  %v92_v53 = vmul.u32 6554, %v74_v44  ;;  %v93_v54 = vmul.u32 6554, %v75_v45  ;;  %v133_v55 = vsub.s32 %v376_v35, %v73_v42 }
  0x3b   :  { %238 = vst [vmem:[#allocation7] sm:$0x3f] %v234_v48  ;;  %v87_v57 = vshra.s32 %v81_v49, 16  ;;  %v97_v58 = vshra.s32 %v91_v51, 16  ;;  %v103_v59 = vmul.u32 6554, %v85_v50  ;;  %v134_v61 = vsub.s32 %v62_v37, %v74_v44 }
  0x3c   :  { %v98_v62 = vshra.s32 %v92_v53, 16  ;;  %v99_v0 = vshra.s32 %v93_v54, 16  ;;  %v104_v1 = vmul.u32 6554, %v86_v52  ;;  %v135_v2 = vsub.s32 %v63_v41, %v75_v45 }
  0x3d   :  { %v105_v3 = vmul.u32 6554, %v87_v57  ;;  %v109_v4 = vshra.s32 %v103_v59, 16  ;;  %v115_v5 = vmul.u32 6554, %v97_v58  ;;  %v139_v6 = vsub.s32 %v85_v50, %v97_v58 }
  0x3e   :  { %v110_v7 = vshra.s32 %v104_v1, 16  ;;  %v116_v8 = vmul.u32 6554, %v98_v62  ;;  %v117_v9 = vmul.u32 6554, %v99_v0  ;;  %v140_v10 = vsub.s32 %v86_v52, %v98_v62 }
  0x3f   :  { %v111_v12 = vshra.s32 %v105_v3, 16  ;;  %v121_v13 = vshra.s32 %v115_v5, 16  ;;  %v141_v35 = vsub.s32 %v87_v57, %v99_v0  ;;  %v151_v14 = vmul.u32 10, %v133_v55 }
  0x40   :  { %v122_v15 = vshra.s32 %v116_v8, 16  ;;  %v123_v16 = vshra.s32 %v117_v9, 16  ;;  %v152_v17 = vmul.u32 10, %v134_v61  ;;  %v153_v18 = vmul.u32 10, %v135_v2 }
  0x41   :  { %v145_v19 = vsub.s32 %v109_v4, %v121_v13  ;;  %vm157_vm12 = vcmp.eq.s32.totalorder %v127_v60, %v151_v14  ;;  %v169_v20 = vmul.u32 10, %v139_v6  ;;  %v170_v21 = vmul.u32 10, %v140_v10 }
  0x42   :  { %v146_v22 = vsub.s32 %v110_v7, %v122_v15  ;;  %v147_v23 = vsub.s32 %v111_v12, %v123_v16  ;;  %vm158_vm13 = vcmp.eq.s32.totalorder %v128_v34, %v152_v17  ;;  %vm159_vm14 = vcmp.eq.s32.totalorder %v129_v47, %v153_v18 }
  0x43   :  { %v163_v24 = vsel %vm157_vm12, 1, %v336_v63  ;;  %v164_v25 = vsel %vm158_vm13, 1, %v336_v63  ;;  %v165_v26 = vsel %vm159_vm14, 1, %v336_v63  ;;  %v171_v27 = vmul.u32 10, %v141_v35 }
  0x44   :  { %vm175_vm15 = vcmp.eq.s32.totalorder %v133_v55, %v169_v20  ;;  %vm176_vm0 = vcmp.eq.s32.totalorder %v134_v61, %v170_v21  ;;  %v193_v28 = vmul.u32 10, %v145_v19  ;;  %v194_v29 = vmul.u32 10, %v146_v22 }
  0x45   :  { %vm177_vm1 = vcmp.eq.s32.totalorder %v135_v2, %v171_v27  ;;  %v181_v11 = vsel %vm175_vm15, 1, %v336_v63  ;;  %v182_v56 = vsel %vm176_vm0, 1, %v336_v63  ;;  %v195_v60 = vmul.u32 10, %v147_v23 }
  0x46   :  { %v183_v30 = vsel %vm177_vm1, 1, %v336_v63  ;;  %v187_v31 = vadd.s32 %v181_v11, %v163_v24  ;;  %v188_v32 = vadd.s32 %v182_v56, %v164_v25  ;;  %vm199_vm2 = vcmp.eq.s32.totalorder %v139_v6, %v193_v28 }
  0x47   :  { %v189_v33 = vadd.s32 %v183_v30, %v165_v26  ;;  %vm200_vm3 = vcmp.eq.s32.totalorder %v140_v10, %v194_v29  ;;  %vm201_vm4 = vcmp.eq.s32.totalorder %v141_v35, %v195_v60  ;;  %v205_v34 = vsel %vm199_vm2, 1, %v336_v63 }
  0x48   :  { %v206_v36 = vsel %vm200_vm3, 1, %v336_v63  ;;  %v207_v37 = vsel %vm201_vm4, 1, %v336_v63  ;;  %v211_v38 = vadd.s32 %v205_v34, %v187_v31  ;;  %vm217_vm5 = vcmp.eq.s32.totalorder %v145_v19, 0 }
  0x49   :  { %v212_v39 = vadd.s32 %v206_v36, %v188_v32  ;;  %v213_v40 = vadd.s32 %v207_v37, %v189_v33  ;;  %vm218_vm6 = vcmp.eq.s32.totalorder %v146_v22, 0  ;;  %vm219_vm7 = vcmp.eq.s32.totalorder %v147_v23, 0 }
  0x4a   :  { %v223_v41 = vsel %vm217_vm5, 1, %v336_v63  ;;  %v224_v42 = vsel %vm218_vm6, 1, %v336_v63  ;;  %v225_v43 = vsel %vm219_vm7, 1, %v336_v63 }
  0x4b   :  { %v229_v44 = vadd.s32 %v223_v41, %v211_v38  ;;  %v230_v45 = vadd.s32 %v224_v42, %v212_v39  ;;  %v231_v46 = vadd.s32 %v225_v43, %v213_v40 }
  0x4d   :  { %v235_v47 = vpack.c.b16 %v230_v45, %v229_v44  ;;  %v236_v48 = vpack.c.b16 %v231_v46, %v231_v46 }
  0x4f   :  { %v237_v49 = vpack.c.b8 %v236_v48, %v235_v47 }
  0x51   :  { %239 = vst [vmem:[#allocation7 + $0x6] sm:$0x3f] %v237_v49 }
  0x52   :  { %317 = shalt.err (!%p314_p0)
}
  0x53   :  { %s338_s22 = smov 96   ;;  %s339_s23 = smov 6  }
  0x54   :  { %251 = dma.vmem_to_hbm [thread:$0]  %s246_s1, 192, %s425_s2, [#allocation4], %s338_s22, %s338_s22, %s339_s23  }
  0x55   :  { %330 = dma.done.wait [#allocation4], 192  }
  0x56   :  { %331 = vsyncadd [#allocation4], 4294967104 }
  0x57   :  { %255 = vsyncpa [#allocation3], 1 }
  0x58   :  { %256 = vsyncpa [#allocation6], 1 }
  0x59   :  { %257 = vsyncpa [#allocation4], 1 }

</bundles_post_ra>
